<compile_context>
chip_gen: v7x
topology: tpu7x:2x2x1
jax: 0.10.0
libtpu: 0.0.40
codegen_flags: <defaults>
</compile_context>

<pallas_src>
import math

import jax
import jax.numpy as jnp
from jax.experimental import pallas as pl
from jax.experimental.pallas import tpu as pltpu
from typing import NamedTuple


def _round_up(v, m):
    return ((v + m - 1) // m) * m


def _vmem_capacity():
    try:
        info = pltpu.get_tpu_info()
        return int(getattr(info, "vmem_capacity_bytes", 64 << 20))
    except Exception:
        return 64 << 20          # conservative default (v7x-sized VMEM)


def _vmem_limit(need_bytes):
    cap = _vmem_capacity()
    # Leave ~20% headroom for compiler/internal scratch; never request all of VMEM.
    return int(min(max(need_bytes + (4 << 20), 16 << 20), int(cap * 0.8)))


# ------------------ gridless fused kernel (A resident, read once) -------------
def _fused_kernel(a_ref, xw_ref, b1_ref, wh_ref, bh_ref, out_ref):
    a = a_ref[...]                                                         # bf16 [N, N]
    h = jnp.maximum(
        jnp.dot(a, xw_ref[...], preferred_element_type=jnp.float32) + b1_ref[...],
        0.0).astype(jnp.bfloat16)                                          # [N, H_pad]
    g = jnp.dot(h, wh_ref[...],
                preferred_element_type=jnp.float32).astype(jnp.bfloat16)   # [N, O_pad]
    out = jnp.dot(a, g, preferred_element_type=jnp.float32) + bh_ref[...]
    out_ref[...] = out.astype(out_ref.dtype)                               # lane-dense


def _encode_small(a_bf, xw_bf, b1p, whp, bhp):
    n = a_bf.shape[0]
    h_pad = xw_bf.shape[1]
    o_pad = whp.shape[1]
    vmem = pl.BlockSpec(memory_space=pltpu.MemorySpace.VMEM)
    need = (2 * n * n + 2 * n * h_pad + 4 * h_pad + 4 * h_pad * o_pad + 4 * o_pad
            + 4 * n * h_pad + 2 * n * o_pad + 4 * n * o_pad)
    flops = 2 * n * n * h_pad + 2 * n * h_pad * o_pad + 2 * n * n * o_pad
    return pl.pallas_call(
        _fused_kernel,
        out_shape=jax.ShapeDtypeStruct((n, o_pad), jnp.float32),
        in_specs=[vmem] * 5,
        out_specs=vmem,
        compiler_params=pltpu.CompilerParams(vmem_limit_bytes=_vmem_limit(need)),
        cost_estimate=pl.CostEstimate(flops=int(flops), transcendentals=0,
                                      bytes_accessed=int(need)),
    )(a_bf, xw_bf, b1p, whp, bhp)


# ------------------ K-tiled streamed two-pass path (large graphs) -------------
def _pass1_kernel(a_ref, xw_ref, b1_ref, h_ref, acc_ref):
    # h_tile = relu(sum_k A[i,k] @ XW[k] + b1)
    k = pl.program_id(1)

    @pl.when(k == 0)
    def _():
        acc_ref[...] = jnp.zeros_like(acc_ref)

    acc_ref[...] += jnp.dot(a_ref[...], xw_ref[...],
                            preferred_element_type=jnp.float32)

    @pl.when(k == pl.num_programs(1) - 1)
    def _():
        h_ref[...] = jnp.maximum(acc_ref[...] + b1_ref[...], 0.0).astype(h_ref.dtype)


def _pass2_kernel(a_ref, g_ref, bh_ref, out_ref, acc_ref):
    # [mu | logstd]_tile = sum_k A[i,k] @ G[k] + bcat
    k = pl.program_id(1)

    @pl.when(k == 0)
    def _():
        acc_ref[...] = jnp.zeros_like(acc_ref)

    acc_ref[...] += jnp.dot(a_ref[...], g_ref[...],
                            preferred_element_type=jnp.float32)

    @pl.when(k == pl.num_programs(1) - 1)
    def _():
        out_ref[...] = (acc_ref[...] + bh_ref[...]).astype(out_ref.dtype)


def _encode_tiled(a_bf, xw_bf, b1p, whp, bhp, row_tile, k_tile):
    n_pad = a_bf.shape[0]
    h_pad = xw_bf.shape[1]
    o_pad = whp.shape[1]
    n_row = n_pad // row_tile
    n_k = n_pad // k_tile

    # ---- pass 1: h[Np, H_pad] (bf16), K-tiled accumulator ----
    p1_need = (2 * 2 * row_tile * k_tile + 2 * 2 * k_tile * h_pad   # streamed A, XW (dbl buf)
               + 4 * h_pad + 2 * 2 * row_tile * h_pad               # b1, h output
               + 4 * row_tile * h_pad)                              # f32 accumulator
    p1_flops = 2 * n_pad * n_pad * h_pad
    p1_bytes = 2 * n_pad * n_pad + 2 * n_pad * h_pad * n_row + 2 * n_pad * h_pad
    h = pl.pallas_call(
        _pass1_kernel,
        out_shape=jax.ShapeDtypeStruct((n_pad, h_pad), jnp.bfloat16),
        grid=(n_row, n_k),
        in_specs=[
            pl.BlockSpec((row_tile, k_tile), lambda i, k: (i, k)),  # stream A blocks
            pl.BlockSpec((k_tile, h_pad), lambda i, k: (k, 0)),     # stream XW (K-tiled)
            pl.BlockSpec((1, h_pad), lambda i, k: (0, 0)),          # b1 resident
        ],
        out_specs=pl.BlockSpec((row_tile, h_pad), lambda i, k: (i, 0)),
        scratch_shapes=[pltpu.VMEM((row_tile, h_pad), jnp.float32)],
        compiler_params=pltpu.CompilerParams(
            dimension_semantics=("parallel", "arbitrary"),
            vmem_limit_bytes=_vmem_limit(p1_need)),
        cost_estimate=pl.CostEstimate(flops=int(p1_flops), transcendentals=0,
                                      bytes_accessed=int(p1_bytes)),
    )(a_bf, xw_bf, b1p)

    # Reassociated head projection: tiny [Np,128]x[128,128] matmul in plain XLA;
    # negligible traffic vs. streaming A, keeps both Pallas passes a single dot.
    g = jnp.dot(h, whp, preferred_element_type=jnp.float32).astype(jnp.bfloat16)

    # ---- pass 2: [mu | logstd][Np, O_pad] (f32, lane-dense), K-tiled accumulator ----
    p2_need = (2 * 2 * row_tile * k_tile + 2 * 2 * k_tile * o_pad
               + 4 * o_pad + 2 * 4 * row_tile * o_pad
               + 4 * row_tile * o_pad)
    p2_flops = 2 * n_pad * n_pad * o_pad
    p2_bytes = 2 * n_pad * n_pad + 2 * n_pad * o_pad * n_row + 4 * n_pad * o_pad
    out = pl.pallas_call(
        _pass2_kernel,
        out_shape=jax.ShapeDtypeStruct((n_pad, o_pad), jnp.float32),
        grid=(n_row, n_k),
        in_specs=[
            pl.BlockSpec((row_tile, k_tile), lambda i, k: (i, k)),  # stream A blocks
            pl.BlockSpec((k_tile, o_pad), lambda i, k: (k, 0)),     # stream G (K-tiled)
            pl.BlockSpec((1, o_pad), lambda i, k: (0, 0)),          # bcat resident
        ],
        out_specs=pl.BlockSpec((row_tile, o_pad), lambda i, k: (i, 0)),
        scratch_shapes=[pltpu.VMEM((row_tile, o_pad), jnp.float32)],
        compiler_params=pltpu.CompilerParams(
            dimension_semantics=("parallel", "arbitrary"),
            vmem_limit_bytes=_vmem_limit(p2_need)),
        cost_estimate=pl.CostEstimate(flops=int(p2_flops), transcendentals=0,
                                      bytes_accessed=int(p2_bytes)),
    )(a_bf, g, bhp)
    return out


# ------------------------- cacheable prep + dispatch ---------------------------
class EncoderPrep(NamedTuple):
    mode: str            # "small" (A resident, HBM-read once) or "tiled" (streamed)
    a_bf: jax.Array      # [Np, Np] bf16 (Np == N for "small")
    w1p: jax.Array       # [Cin, H_pad]   f32, zero-padded
    b1p: jax.Array       # [1, H_pad]     f32
    whp: jax.Array       # [H_pad, O_pad] f32, fused [Wmu | Wlogstd], zero-padded
    bhp: jax.Array       # [1, O_pad]     f32
    n: int
    n_pad: int
    out_c: int
    row_tile: int
    k_tile: int


def prepare_encoder(a_norm, w1, b1, wmu, bmu, wls, bls, *,
                    row_tile=512, k_tile=512, force_tiled=False):
    """Hoistable prep (cache across calls): bf16/padded A and fused padded weights."""
    n = a_norm.shape[0]
    in_c, hid = w1.shape
    out_c = wmu.shape[1]
    h_pad = _round_up(hid, 128)
    o_pad = _round_up(2 * out_c, 128)

    # Fuse mu/logstd heads and zero-pad all channel dims to lane-dense widths.
    # Exact: padded weight columns/rows are zero, so padded lanes contribute nothing.
    w1p = jnp.zeros((in_c, h_pad), jnp.float32).at[:, :hid].set(w1.astype(jnp.float32))
    b1p = jnp.zeros((1, h_pad), jnp.float32).at[:, :hid].set(jnp.reshape(b1, (1, hid)))
    whp = jnp.zeros((h_pad, o_pad), jnp.float32)
    whp = whp.at[:hid, :out_c].set(wmu).at[:hid, out_c:2 * out_c].set(wls)
    bhp = jnp.zeros((1, o_pad), jnp.float32)
    bhp = bhp.at[:, :out_c].set(jnp.reshape(bmu, (1, out_c)))
    bhp = bhp.at[:, out_c:2 * out_c].set(jnp.reshape(bls, (1, out_c)))

    # Generation-aware dispatch: keep A resident (single HBM read for both layers)
    # when it fits with headroom.  Threshold is ~2x smaller on v7x (64 MiB VMEM)
    # than on v5e/v6e (128 MiB).  Hard cap keeps the single-block kernel modest;
    # beyond it the streamed path also exposes row-parallelism (2 TCs on v7x).
    cap = _vmem_capacity()
    small_need = (2 * n * n + 2 * n * h_pad + 4 * h_pad + 4 * h_pad * o_pad
                  + 4 * o_pad + 4 * n * h_pad + 2 * n * o_pad + 4 * n * o_pad)
    use_small = (not force_tiled) and (n <= 4096) and (small_need <= 0.45 * cap)

    if use_small:
        return EncoderPrep("small", a_norm.astype(jnp.bfloat16), w1p, b1p, whp, bhp,
                           n, n, out_c, row_tile, k_tile)

    # Streamed path: pad N to the tile grid (zero rows/cols of A -> exact result).
    lcm = row_tile * k_tile // math.gcd(row_tile, k_tile)
    n_pad = _round_up(n, lcm)
    a_bf = jnp.zeros((n_pad, n_pad), jnp.bfloat16).at[:n, :n].set(
        a_norm.astype(jnp.bfloat16))
    return EncoderPrep("tiled", a_bf, w1p, b1p, whp, bhp, n, n_pad, out_c,
                       row_tile, k_tile)


def encode(prep, x):
    """(mu, logstd) = VariationalEncoder(x, edge_index) with A_norm baked into prep."""
    # Reassociation: XW = X @ W1 (tiny lane-dense [N, H_pad] slab, plain XLA),
    # so layer 1 inside the kernel is a single A @ XW dot.
    xw = jnp.dot(x.astype(jnp.float32), prep.w1p).astype(jnp.bfloat16)
    if prep.mode == "small":
        out = _encode_small(prep.a_bf, xw, prep.b1p, prep.whp, prep.bhp)
    else:
        if prep.n_pad != prep.n:
            xw = jnp.zeros((prep.n_pad, xw.shape[1]), jnp.bfloat16).at[:prep.n].set(xw)
        out = _encode_tiled(prep.a_bf, xw, prep.b1p, prep.whp, prep.bhp,
                            prep.row_tile, prep.k_tile)
    out = out[:prep.n]
    return out[:, :prep.out_c], out[:, prep.out_c:2 * prep.out_c]


def variational_encoder(a_norm, x, w1, b1, wmu, bmu, wls, bls, *,
                        row_tile=512, k_tile=512, force_tiled=False):
    prep = prepare_encoder(a_norm, w1, b1, wmu, bmu, wls, bls,
                           row_tile=row_tile, k_tile=k_tile, force_tiled=force_tiled)
    return encode(prep, x)


# ------------------------------ plain-JAX glue --------------------------------
def gcn_norm_dense(edge_index, num_nodes):
    """Dense symmetric GCN normalization with self loops (PyG gcn_norm) — preprocessing."""
    src, dst = edge_index[0], edge_index[1]
    a = jnp.zeros((num_nodes, num_nodes), jnp.float32)
    a = a.at[dst, src].add(1.0)                      # message flows source -> target
    a = a + jnp.eye(num_nodes, dtype=jnp.float32)    # add self loops
    deg = a.sum(axis=1)
    dinv = jnp.where(deg > 0, 1.0 / jnp.sqrt(deg), 0.0)
    return dinv[:, None] * a * dinv[None, :]


def reference(a_norm, x, w1, b1, wmu, bmu, wls, bls):
    """Pure-JAX reference mirroring the kernel's reassociation and bf16 quantization points."""
    out_c = wmu.shape[1]
    a = a_norm.astype(jnp.bfloat16).astype(jnp.float32)
    xw = jnp.dot(x, w1).astype(jnp.bfloat16).astype(jnp.float32)
    h = jnp.maximum(a @ xw + jnp.reshape(b1, (1, -1)), 0.0)
    h = h.astype(jnp.bfloat16).astype(jnp.float32)
    wcat = jnp.concatenate([wmu, wls], axis=1)
    bcat = jnp.concatenate([jnp.reshape(bmu, (1, -1)), jnp.reshape(bls, (1, -1))], axis=1)
    g = (h @ wcat).astype(jnp.bfloat16).astype(jnp.float32)
    out = a @ g + bcat
    return out[:, :out_c], out[:, out_c:]


# ---------------------------------- driver ------------------------------------
if __name__ == "__main__":
    key = jax.random.PRNGKey(0)

    def lin_init(kw, kb, fan_in, fan_out):
        bound = 1.0 / jnp.sqrt(fan_in)
        w = jax.random.uniform(kw, (fan_in, fan_out), jnp.float32, -bound, bound)
        b = jax.random.uniform(kb, (1, fan_out), jnp.float32, -bound, bound)
        return w, b

    def make_graph(k, n):
        ring_src = jnp.arange(n)
        ring_dst = (jnp.arange(n) + 1) % n
        rnd_src = jax.random.randint(k, (n // 2,), 0, n)
        rnd_dst = (rnd_src + 3) % n
        src = jnp.concatenate([ring_src, ring_dst, rnd_src, rnd_dst])
        dst = jnp.concatenate([ring_dst, ring_src, rnd_dst, rnd_src])
        return jnp.stack([src, dst])                 # [2, E]

    IN_C, HID_C, OUT_C = 8, 32, 16
    cases = (
        (16, False, "small/A-resident"),
        (512, True, "tiled exact-fit"),
        (600, True, "tiled ragged/padded"),
    )
    for n, force_tiled, tag in cases:
        (k_x, k_e, k_w1, k_b1, k_wm, k_bm, k_wl, k_bl, key) = jax.random.split(key, 9)
        x = jax.random.normal(k_x, (n, IN_C), jnp.float32)
        a_norm = gcn_norm_dense(make_graph(k_e, n), n)
        w1, b1 = lin_init(k_w1, k_b1, IN_C, HID_C)
        wmu, bmu = lin_init(k_wm, k_bm, HID_C, OUT_C)
        wls, bls = lin_init(k_wl, k_bl, HID_C, OUT_C)

        mu, logstd = variational_encoder(a_norm, x, w1, b1, wmu, bmu, wls, bls,
                                         row_tile=256, k_tile=256,
                                         force_tiled=force_tiled)
        jax.block_until_ready((mu, logstd))

        mu_ref, ls_ref = reference(a_norm, x, w1, b1, wmu, bmu, wls, bls)
        assert mu.shape == (n, OUT_C) and logstd.shape == (n, OUT_C), f"shape ({tag})"
        assert jnp.allclose(mu, mu_ref, atol=3e-2, rtol=3e-2), f"mu mismatch ({tag})"
        assert jnp.allclose(logstd, ls_ref, atol=3e-2, rtol=3e-2), f"logstd mismatch ({tag})"

    print("KERNEL_OK")
</pallas_src>

<mosaic_0001>
module attributes {stable_mosaic.version = 11 : i64} {
  func.func @_fused_kernel(%arg0: memref<16x16xbf16, #tpu.memory_space<vmem>>, %arg1: memref<16x128xbf16, #tpu.memory_space<vmem>>, %arg2: memref<1x128xf32, #tpu.memory_space<vmem>>, %arg3: memref<128x128xf32, #tpu.memory_space<vmem>>, %arg4: memref<1x128xf32, #tpu.memory_space<vmem>>, %arg5: memref<16x128xf32, #tpu.memory_space<vmem>>) attributes {dimension_semantics = [], scalar_prefetch = 0 : i64, scratch_operands = 0 : i64, tpu.core_type = #tpu.core_type<tc>} {
    %c0 = arith.constant 0 : index
    %c0_0 = arith.constant 0 : index
    %0 = vector.load %arg0[%c0, %c0_0] : memref<16x16xbf16, #tpu.memory_space<vmem>>, vector<16x16xbf16>
    %c0_1 = arith.constant 0 : index
    %c0_2 = arith.constant 0 : index
    %1 = vector.load %arg1[%c0_1, %c0_2] : memref<16x128xbf16, #tpu.memory_space<vmem>>, vector<16x128xbf16>
    %cst = arith.constant dense<0.000000e+00> : vector<16x128xf32>
    %2 = tpu.matmul %0, %1, %cst {dimension_numbers = #tpu.dot_dimension_numbers<[1], [0], [0], [1], [0, 0, 1, 1], [], []>} : vector<16x16xbf16>, vector<16x128xbf16>, vector<16x128xf32> -> vector<16x128xf32>
    %c0_3 = arith.constant 0 : index
    %c0_4 = arith.constant 0 : index
    %3 = vector.load %arg2[%c0_3, %c0_4] : memref<1x128xf32, #tpu.memory_space<vmem>>, vector<1x128xf32>
    %4 = vector.broadcast %3 : vector<1x128xf32> to vector<16x128xf32>
    %5 = arith.addf %2, %4 : vector<16x128xf32>
    %cst_5 = arith.constant 0.000000e+00 : f32
    %6 = vector.broadcast %cst_5 : f32 to vector<16x128xf32>
    %7 = arith.maximumf %5, %6 : vector<16x128xf32>
    %8 = arith.truncf %7 : vector<16x128xf32> to vector<16x128xbf16>
    %c0_6 = arith.constant 0 : index
    %c0_7 = arith.constant 0 : index
    %9 = vector.load %arg3[%c0_6, %c0_7] : memref<128x128xf32, #tpu.memory_space<vmem>>, vector<128x128xf32>
    %cst_8 = arith.constant dense<0.000000e+00> : vector<16x128xf32>
    %10 = tpu.matmul %8, %9, %cst_8 {dimension_numbers = #tpu.dot_dimension_numbers<[1], [0], [0], [1], [0, 0, 1, 1], [], []>} : vector<16x128xbf16>, vector<128x128xf32>, vector<16x128xf32> -> vector<16x128xf32>
    %11 = arith.truncf %10 : vector<16x128xf32> to vector<16x128xbf16>
    %cst_9 = arith.constant dense<0.000000e+00> : vector<16x128xf32>
    %12 = tpu.matmul %0, %11, %cst_9 {dimension_numbers = #tpu.dot_dimension_numbers<[1], [0], [0], [1], [0, 0, 1, 1], [], []>} : vector<16x16xbf16>, vector<16x128xbf16>, vector<16x128xf32> -> vector<16x128xf32>
    %c0_10 = arith.constant 0 : index
    %c0_11 = arith.constant 0 : index
    %13 = vector.load %arg4[%c0_10, %c0_11] : memref<1x128xf32, #tpu.memory_space<vmem>>, vector<1x128xf32>
    %14 = vector.broadcast %13 : vector<1x128xf32> to vector<16x128xf32>
    %15 = arith.addf %12, %14 : vector<16x128xf32>
    %c0_12 = arith.constant 0 : index
    %c0_13 = arith.constant 0 : index
    %16 = vector.load %arg5[%c0_12, %c0_13] : memref<16x128xf32, #tpu.memory_space<vmem>>, vector<16x128xf32>
    tpu.vector_store %arg5[%c0_12, %c0_13], %15 {strides = array<i32>} : memref<16x128xf32, #tpu.memory_space<vmem>>, vector<16x128xf32>,
    return
  }
}

</mosaic_0001>

<bundles_post_ra>
// kernel: tpu_custom_call.1
= control target key start
LH: loop header
LB: loop body
LE: loop exit
PB: predicated region body
PF: predicated region fallthrough
CT: control target
= control target key end

     0   :  { %10 = vsyncpa [#allocation3], 0  ;;  %s610_s0 = inlined_call_operand.hbm [shape: bf16[16,16], index: 0, kind: input, shape index: {}]   ;;  %s611_s1 = inlined_call_operand.hbm [shape: bf16[16,128], index: 1, kind: input, shape index: {}]   ;;  %s612_s2 = inlined_call_operand.vmem [shape: f32[1,128], index: 2, kind: input, shape index: {}]   ;;  %s613_s3 = inlined_call_operand.hbm [shape: f32[128,128], index: 3, kind: input, shape index: {}]   ;;  %s614_s4 = inlined_call_operand.vmem [shape: f32[1,128], index: 4, kind: input, shape index: {}]   ;;  %s615_s5 = inlined_call_operand.hbm [shape: f32[16,128], index: 5, kind: output, shape index: {}]  }
   0x1   :  { %11 = vsyncpa [#allocation6], 0 }
   0x2   :  { %12 = vsyncpa [#allocation4], 0  ;;  %s497_s18 = smov [#allocation5]   ;;  %s498_s20 = smov [#allocation2]  }
   0x3   :  { %s30_s19 = sshll.u32 %s497_s18, 4  ;;  %s18_s21 = sshll.u32 %s498_s20, 4  ;;  %s31_s19 = int_to_ptr.vmem [resolvable:$true] %s30_s19  ;;  %s538_s21 = int_to_ptr.vmem [resolvable:$true] %s18_s21 }
   0x4   :  { %s403_s24 = scalar_lea.hbm %s611_s1, 128 }
   0x5   :  { %p404_p0 = scmp.ne.s32.totalorder %s611_s1, %s403_s24  ;;  %p407_p1 = scmp.lt.u32.totalorder %s403_s24, %s611_s1 }
   0x7   :  { %p409_p2 = pnand %p407_p1, %p404_p0 }
   0x9   :  { %412 = shalt.err (!%p409_p2)
}
   0xa   :  { %s413_s29 = scalar_lea.vmem %s31_s19, 128  ;;  %p418_p4 = scmp.lt.s32.totalorder %s31_s19, %s31_s19 }
   0xb   :  { %p414_p3 = scmp.ne.s32.totalorder %s31_s19, %s413_s29  ;;  %p419_p5 = scmp.lt.s32.totalorder %s413_s29, %s413_s29 }
   0xd   :  { %p420_p6 = por %p419_p5, %p418_p4 }
   0xf   :  { %p421_p7 = pnand %p420_p6, %p414_p3 }
  0x11   :  { %424 = shalt.err (!%p421_p7)
}
  0x12   :  { %s499_s30 = smov 64   ;;  %s500_s6 = smov 4  }
  0x13   :  { %36 = dma.hbm_to_vmem [thread:$0]  %s611_s1, 128, %s31_s19, [#allocation6], %s499_s30, %s499_s30, %s500_s6  }
  0x14   :  { %s425_s11 = scalar_lea.hbm %s610_s0, 128 }
  0x15   :  { %p426_p8 = scmp.ne.s32.totalorder %s610_s0, %s425_s11  ;;  %p429_p9 = scmp.lt.u32.totalorder %s425_s11, %s610_s0 }
  0x17   :  { %p431_p10 = pnand %p429_p9, %p426_p8 }
  0x19   :  { %434 = shalt.err (!%p431_p10)
}
  0x1a   :  { %s435_s16 = scalar_lea.vmem %s538_s21, 128  ;;  %p440_p12 = scmp.lt.s32.totalorder %s538_s21, %s538_s21 }
  0x1b   :  { %p436_p11 = scmp.ne.s32.totalorder %s538_s21, %s435_s16  ;;  %p441_p13 = scmp.lt.s32.totalorder %s435_s16, %s435_s16 }
  0x1d   :  { %p442_p0 = por %p441_p13, %p440_p12 }
  0x1f   :  { %p443_p1 = pnand %p442_p0, %p436_p11 }
  0x21   :  { %446 = shalt.err (!%p443_p1)
}
  0x22   :  { %24 = dma.hbm_to_vmem [thread:$0]  %s610_s0, 128, %s538_s21, [#allocation3], %s499_s30, %s499_s30, %s500_s6  }
  0x23   :  { %s501_s18 = smov [#allocation7]   ;;  %s447_s23 = scalar_lea.hbm %s613_s3, 2048 }
  0x24   :  { %s44_s19 = sshll.u32 %s501_s18, 4  ;;  %p448_p2 = scmp.ne.s32.totalorder %s613_s3, %s447_s23  ;;  %s45_s19 = int_to_ptr.vmem [resolvable:$true] %s44_s19 }
  0x25   :  { %p451_p3 = scmp.lt.u32.totalorder %s447_s23, %s613_s3 }
  0x27   :  { %p453_p4 = pnand %p451_p3, %p448_p2 }
  0x29   :  { %456 = shalt.err (!%p453_p4)
}
  0x2a   :  { %s457_s28 = scalar_lea.vmem %s45_s19, 2048  ;;  %p462_p6 = scmp.lt.s32.totalorder %s45_s19, %s45_s19 }
  0x2b   :  { %p458_p5 = scmp.ne.s32.totalorder %s45_s19, %s457_s28  ;;  %p463_p7 = scmp.lt.s32.totalorder %s457_s28, %s457_s28 }
  0x2d   :  { %p464_p8 = por %p463_p7, %p462_p6 }
  0x2f   :  { %p465_p9 = pnand %p464_p8, %p458_p5 }
  0x31   :  { %468 = shalt.err (!%p465_p9)
}
  0x32   :  { %s502_s0 = smov 128   ;;  %s503_s21 = smov 8  }
  0x33   :  { %50 = dma.hbm_to_vmem [thread:$0]  %s613_s3, 2048, %s45_s19, [#allocation6], %s502_s0, %s502_s0, %s503_s21  }
  0x34   :  { %491 = dma.done.wait [#allocation3], 128  }
  0x35   :  { %492 = vsyncadd [#allocation3], 4294967168 }
  0x36   :  { %493 = dma.done.wait [#allocation6], 2176  }
  0x37   :  { %494 = vsyncadd [#allocation6], 4294965120  ;;  %v504_v0 = vmov 0.0   ;;  %vm505_vm0 = vmmov 0   ;;  %v506_v1 = vmov 0.0|0.0   ;;  %v401_v2 = vld [vmem:[#allocation5] sm:$0xff]  }
  0x38   :  { %318 = vmatprep.subr.bf16.mxu0 %v504_v0  ;;  %320 = vmatprep.mubr.msk.bf16.mxu0 %vm505_vm0, %v504_v0  ;;  %v402_v3 = vld [vmem:[#allocation2] sm:$0xff]   ;;  %vm85_vm1 = vcmask 130048   ;;  %v133_v4 = vld [vmem:[#allocation7] sm:$0xff]  ;;  %v134_v5 = vld [vmem:[#allocation7 + $0x8] sm:$0xff]  ;;  %s507_s8 = smov [#allocation8]  }
  0x39   :  { %366 = vmatprep.subr.bf16.mxu1 %v506_v1  ;;  %356 = vmatprep.mubr.msk.bf16.mxu1 %vm505_vm0, %v504_v0  ;;  %v135_v6 = vld [vmem:[#allocation7 + $0x10] sm:$0xff]  ;;  %v367_v7 = vpack.c.bf16 %v134_v5, %v133_v4  ;;  %v136_v8 = vld [vmem:[#allocation7 + $0x18] sm:$0xff]  ;;  %v137_v10 = vld [vmem:[#allocation7 + $0x20] sm:$0xff]  ;;  %s278_s9 = sshll.u32 %s507_s8, 4  ;;  %s279_s9 = int_to_ptr.vmem [resolvable:$true] %s278_s9 }
  0x3a   :  { %319 = vmatpush3.bf16.msra.mxu0 %v401_v2  ;;  %v370_v9 = vpack.c.bf16 %v136_v8, %v135_v6  ;;  %v138_v11 = vld [vmem:[#allocation7 + $0x28] sm:$0xff]  ;;  %v139_v13 = vld [vmem:[#allocation7 + $0x30] sm:$0xff]  ;;  %v140_v14 = vld [vmem:[#allocation7 + $0x38] sm:$0xff]  ;;  %s469_s10 = scalar_lea.vmem %s279_s9, 256  ;;  %p474_p11 = scmp.lt.s32.totalorder %s279_s9, %s279_s9 }
  0x3b   :  { %360 = vmatprep.subr.bf16.mxu0 %v504_v0  ;;  %368 = vmatpush3.bf16.msra.mxu1 %v367_v7  ;;  %v373_v12 = vpack.c.bf16 %v138_v11, %v137_v10  ;;  %v376_v15 = vpack.c.bf16 %v140_v14, %v139_v13  ;;  %v141_v16 = vld [vmem:[#allocation7 + $0x40] sm:$0xff]  ;;  %v142_v17 = vld [vmem:[#allocation7 + $0x48] sm:$0xff]  ;;  %v143_v19 = vld [vmem:[#allocation7 + $0x50] sm:$0xff]  ;;  %p470_p10 = scmp.ne.s32.totalorder %s279_s9, %s469_s10  ;;  %p475_p12 = scmp.lt.s32.totalorder %s469_s10, %s469_s10 }
  0x3c   :  { %369 = vmatprep.subr.bf16.mxu1 %v506_v1  ;;  %v379_v18 = vpack.c.bf16 %v142_v17, %v141_v16  ;;  %v144_v20 = vld [vmem:[#allocation7 + $0x58] sm:$0xff]  ;;  %v145_v22 = vld [vmem:[#allocation7 + $0x60] sm:$0xff]  ;;  %v146_v23 = vld [vmem:[#allocation7 + $0x68] sm:$0xff] }
  0x3d   :  { %321 = vmatmul.mubr.msk.bf16.vlgmr.msra.gmra.mrb[0].mxu0 %vm85_vm1, %v402_v3  ;;  %v382_v21 = vpack.c.bf16 %v144_v20, %v143_v19  ;;  %v385_v24 = vpack.c.bf16 %v146_v23, %v145_v22  ;;  %v147_v25 = vld [vmem:[#allocation7 + $0x70] sm:$0xff]  ;;  %v148_v26 = vld [vmem:[#allocation7 + $0x78] sm:$0xff]  ;;  %p476_p13 = por %p475_p12, %p474_p11 }
  0x3e   :  { %362 = vmatprep.mubr.msk.bf16.mxu0 %vm505_vm0, %v504_v0  ;;  %v388_v27 = vpack.c.bf16 %v148_v26, %v147_v25  ;;  %v291_v28 = vld [vmem:[%s612_s2] ss:$0 sm:$0xff] }
  0x3f   :  { %371 = vmatpush3.bf16.msra.mxu1 %v370_v9  ;;  %v295_v43 = vld [vmem:[%s614_s4] ss:$0 sm:$0xff]  ;;  %p477_p0 = pnand %p476_p13, %p470_p10 }
  0x40   :  { %372 = vmatprep.subr.bf16.mxu1 %v506_v1 }
  0x43   :  { %374 = vmatpush3.bf16.msra.mxu1 %v373_v12 }
  0x44   :  { %375 = vmatprep.subr.bf16.mxu1 %v506_v1 }
  0x47   :  { %377 = vmatpush3.bf16.msra.mxu1 %v376_v15 }
  0x48   :  { %378 = vmatprep.subr.bf16.mxu1 %v506_v1 }
  0x4b   :  { %380 = vmatpush3.bf16.msra.mxu1 %v379_v18 }
  0x4c   :  { %381 = vmatprep.subr.bf16.mxu1 %v506_v1 }
  0x4f   :  { %383 = vmatpush3.bf16.msra.mxu1 %v382_v21 }
  0x50   :  { %384 = vmatprep.subr.bf16.mxu1 %v506_v1 }
  0x53   :  { %386 = vmatpush3.bf16.msra.mxu1 %v385_v24 }
  0x54   :  { %387 = vmatprep.subr.bf16.mxu1 %v506_v1 }
  0x57   :  { %389 = vmatpush3.bf16.msra.mxu1 %v388_v27 }
 0x110   :  { %v123_v29 = vpop.f32.mrb[0].mxu0 }
 0x111   :  { %v124_v30 = vadd.f32 %v291_v28, %v123_v29  ;;  %v322_v31 = vpop.f32.mrb[1].mxu0 }
 0x112   :  { %v126_v32 = vpop.f32.mrb[2].mxu0 }
 0x113   :  { %v127_v33 = vadd.f32 %v291_v28, %v126_v32  ;;  %v323_v34 = vpop.f32.mrb[3].mxu0  ;;  %v130_v35 = vmax.f32 %v124_v30, 0.0 }
 0x115   :  { %v131_v36 = vmax.f32 %v127_v33, 0.0 }
 0x117   :  { %v132_v37 = vpack.c.bf16 %v131_v36, %v130_v35 }
 0x119   :  { %357 = vmatmul.mubr.bf16.vlgmr.msra.gmra.mrb[0].mxu1 %v132_v37 }
 0x1ec   :  { %v215_v38 = vpop.f32.mrb[0].mxu1 }
 0x1ed   :  { %v358_v39 = vpop.f32.mrb[1].mxu1 }
 0x1ee   :  { %v218_v40 = vpop.f32.mrb[2].mxu1 }
 0x1ef   :  { %v222_v41 = vpack.c.bf16 %v218_v40, %v215_v38  ;;  %v359_v42 = vpop.f32.mrb[3].mxu1 }
 0x1f1   :  { %361 = vmatpush3.bf16.msra.mxu0 %v222_v41 }
 0x1f4   :  { %363 = vmatmul.mubr.msk.bf16.vlgmr.msra.gmra.mrb[4].mxu0 %vm85_vm1, %v402_v3 }
 0x2c7   :  { %v264_v44 = vpop.f32.mrb[4].mxu0 }
 0x2c8   :  { %v265_v45 = vadd.f32 %v295_v43, %v264_v44  ;;  %v364_v46 = vpop.f32.mrb[5].mxu0 }
 0x2c9   :  { %v267_v47 = vpop.f32.mrb[6].mxu0 }
 0x2ca   :  { %271 = vst [vmem:[#allocation8] sm:$0xff] %v265_v45  ;;  %v268_v48 = vadd.f32 %v295_v43, %v267_v47  ;;  %v365_v49 = vpop.f32.mrb[7].mxu0 }
 0x2cc   :  { %272 = vst [vmem:[#allocation8 + $0x8] sm:$0xff] %v268_v48 }
 0x2cd   :  { %480 = shalt.err (!%p477_p0)
}
 0x2ce   :  { %s481_s12 = scalar_lea.hbm %s615_s5, 256 }
 0x2cf   :  { %p482_p1 = scmp.ne.s32.totalorder %s615_s5, %s481_s12  ;;  %p485_p2 = scmp.lt.u32.totalorder %s481_s12, %s615_s5 }
 0x2d1   :  { %p487_p3 = pnand %p485_p2, %p482_p1 }
 0x2d3   :  { %490 = shalt.err (!%p487_p3)
}
 0x2d4   :  { %284 = dma.vmem_to_hbm [thread:$0]  %s279_s9, 256, %s615_s5, [#allocation4], %s502_s0, %s502_s0, %s503_s21  }
 0x2d5   :  { %495 = dma.done.wait [#allocation4], 256  }
 0x2d6   :  { %496 = vsyncadd [#allocation4], 4294967040 }
 0x2d7   :  { %288 = vsyncpa [#allocation3], 1 }
 0x2d8   :  { %289 = vsyncpa [#allocation6], 1 }
 0x2d9   :  { %290 = vsyncpa [#allocation4], 1 }

</bundles_post_ra>
